<compile_context>
chip_gen: v5e
topology: v5e:2x2
jax: 0.10.0
libtpu: 0.0.40
codegen_flags: <defaults>
</compile_context>

<pallas_src>
import jax
import jax.numpy as jnp
from jax.experimental import pallas as pl
from jax.experimental.pallas import tpu as pltpu

BN_EPS = 1e-5

# The layer_specs this kernel realizes (mirrors the PyTorch constructor arg).
LAYER_SPECS = [
    {"type": "linear", "in_features": 32, "out_features": 64},
    {"type": "activation", "name": "relu"},
    {"type": "dropout", "dropout": 0.1},
    {"type": "batchnorm", "out_features": 64},
    {"type": "linear", "in_features": 64, "out_features": 16},
]


def _round_up(n, m):
    return ((n + m - 1) // m) * m


def _round_down(n, m):
    return (n // m) * m


def _block_diag(w, n):
    """(K, N) -> (n*K, n*N) block-diagonal matrix with n copies of w."""
    if n == 1:
        return w
    K, N = w.shape
    out = jnp.zeros((n * K, n * N), w.dtype)
    for j in range(n):
        out = out.at[j * K:(j + 1) * K, j * N:(j + 1) * N].set(w)
    return out


def mlp_kernel(x_ref, w1_ref, b1_ref, w2_ref, b2_ref, o_ref):
    # Linear 1 (packed/block-diag): x @ W1' + b1'   (MXU, fp32 accumulate)
    h = jnp.dot(x_ref[...], w1_ref[...],
                preferred_element_type=jnp.float32) + b1_ref[...]
    # ReLU (VPU).  Dropout: identity in eval mode.
    h = jnp.maximum(h, 0.0)
    # BatchNorm1d (eval, running stats) is pre-folded into W2/b2 on the host.
    # Linear 2 (packed/block-diag): h @ W2'' + b2''
    y = jnp.dot(h, w2_ref[...], preferred_element_type=jnp.float32) + b2_ref[...]
    o_ref[...] = y.astype(o_ref.dtype)


def mlp_forward(x, params, *, max_block_b=8192):
    """x: (B, D_in) float32. params: dict of deterministic weights."""
    B, d_in = x.shape
    d_hidden = params["w1"].shape[1]
    d_out = params["w2"].shape[1]

    # --- Fold BatchNorm (eval, running stats) into the second linear (f32). --
    scale = params["gamma"] * jax.lax.rsqrt(params["running_var"] + BN_EPS)  # (1,H)
    shift = params["beta"] - params["running_mean"] * scale                  # (1,H)
    w2f = scale.reshape(d_hidden, 1) * params["w2"]                          # (H,Do)
    b2f = shift @ params["w2"] + params["b2"]                                # (1,Do)

    # --- Lane-dense packing: `pack` consecutive rows become one 128-lane row.
    pack = 128 // d_in if (d_in <= 128 and 128 % d_in == 0) else 1
    Bp = _round_up(B, pack)
    if Bp != B:
        # Only a tiny (< pack rows) pad to make the packing reshape legal.
        x = jnp.pad(x, ((0, Bp - B), (0, 0)))
    packed_rows = Bp // pack
    xp = x.reshape(packed_rows, pack * d_in)          # contiguous, free view

    w1p = _block_diag(params["w1"], pack)             # (pack*Din, pack*H)
    b1p = jnp.tile(params["b1"], (1, pack))           # (1, pack*H)
    w2p = _block_diag(w2f, pack)                      # (pack*H, pack*Do)
    b2p = jnp.tile(b2f, (1, pack))                    # (1, pack*Do)

    in_lanes = pack * d_in        # 128
    hid_lanes = pack * d_hidden   # 256
    out_lanes = pack * d_out      # 64

    # --- Batch tiling: big tiles to amortize per-step pipeline overhead.
    #     Ragged tails handled by Pallas boundary-block masking (no full pad).
    target_rows = max(8, max_block_b // pack)
    if packed_rows <= target_rows:
        block_rows = packed_rows                      # single full block
        grid = (1,)
    else:
        block_rows = max(8, _round_down(target_rows, 8))
        grid = (pl.cdiv(packed_rows, block_rows),)

    # Per-step VMEM footprint (double-buffered x/out, hidden intermediate,
    # resident weights); keep the scoped limit comfortably above it but leave
    # compiler headroom (<= 48 MiB, safe for v7x's 64 MiB physical VMEM).
    step_bytes = 4 * block_rows * (2 * in_lanes + hid_lanes + 2 * out_lanes) \
        + 4 * (in_lanes * hid_lanes + hid_lanes * out_lanes + hid_lanes + out_lanes)
    vmem_limit = int(min(max(32 * 1024 * 1024, 2 * step_bytes), 48 * 1024 * 1024))

    flops = 2 * Bp * (d_in * d_hidden + d_hidden * d_out)
    bytes_accessed = 4 * (Bp * (d_in + d_out)
                          + in_lanes * hid_lanes + hid_lanes * out_lanes
                          + hid_lanes + out_lanes)

    out = pl.pallas_call(
        mlp_kernel,
        out_shape=jax.ShapeDtypeStruct((packed_rows, out_lanes), x.dtype),
        grid_spec=pltpu.PrefetchScalarGridSpec(
            num_scalar_prefetch=0,
            grid=grid,
            in_specs=[
                # Batch-tiled, lane-dense packed activation input.
                pl.BlockSpec((block_rows, in_lanes), lambda i: (i, 0)),
                # Weights / biases: constant index_map -> VMEM-resident.
                pl.BlockSpec((in_lanes, hid_lanes), lambda i: (0, 0)),
                pl.BlockSpec((1, hid_lanes), lambda i: (0, 0)),
                pl.BlockSpec((hid_lanes, out_lanes), lambda i: (0, 0)),
                pl.BlockSpec((1, out_lanes), lambda i: (0, 0)),
            ],
            # Output block is 64-lane (pack*d_out), never split on the lane axis.
            out_specs=pl.BlockSpec((block_rows, out_lanes), lambda i: (i, 0)),
        ),
        compiler_params=pltpu.CompilerParams(
            dimension_semantics=("parallel",),
            vmem_limit_bytes=vmem_limit,
        ),
        cost_estimate=pl.CostEstimate(
            flops=flops, transcendentals=0, bytes_accessed=bytes_accessed),
    )(xp, w1p, b1p, w2p, b2p)

    # Free contiguous un-pack, then drop the (at most pack-1) padded rows.
    return out.reshape(Bp, d_out)[:B]


def make_params(key, d_in, d_hidden, d_out):
    """Deterministic synthetic parameters (PyTorch Linear weight is (out, in);
    we store the transpose (in, out) for lane-friendly matmul)."""
    k = jax.random.split(key, 8)
    return {
        "w1": jax.random.normal(k[0], (d_in, d_hidden), jnp.float32) * 0.1,
        "b1": jax.random.normal(k[1], (1, d_hidden), jnp.float32) * 0.1,
        "gamma": 1.0 + 0.1 * jax.random.normal(k[2], (1, d_hidden), jnp.float32),
        "beta": 0.1 * jax.random.normal(k[3], (1, d_hidden), jnp.float32),
        # BatchNorm1d running stats (explicit, non-trivial).
        "running_mean": 0.05 * jax.random.normal(k[4], (1, d_hidden), jnp.float32),
        "running_var": jnp.ones((1, d_hidden), jnp.float32) * 1.2,
        "w2": jax.random.normal(k[5], (d_hidden, d_out), jnp.float32) * 0.1,
        "b2": jax.random.normal(k[6], (1, d_out), jnp.float32) * 0.1,
    }


def mlp_reference(x, p):
    """Unfolded reference: Linear -> ReLU -> (Dropout eval) -> BN(eval) -> Linear."""
    h = x @ p["w1"] + p["b1"]
    h = jnp.maximum(h, 0.0)
    h = (h - p["running_mean"]) * jax.lax.rsqrt(p["running_var"] + BN_EPS) \
        * p["gamma"] + p["beta"]
    return h @ p["w2"] + p["b2"]


if __name__ == "__main__":
    d_in = LAYER_SPECS[0]["in_features"]
    d_hidden = LAYER_SPECS[0]["out_features"]
    d_out = LAYER_SPECS[-1]["out_features"]

    key = jax.random.PRNGKey(0)
    kx, kp, kx2 = jax.random.split(key, 3)
    params = make_params(kp, d_in, d_hidden, d_out)

    # Small primary check (batch=8, single block).
    x = jax.random.normal(kx, (8, d_in), jnp.float32)
    out = jax.block_until_ready(mlp_forward(x, params))
    ref = mlp_reference(x, params)
    assert out.shape == (8, d_out)
    assert jnp.allclose(out, ref, atol=1e-4, rtol=1e-4)

    # Second check exercising the multi-step grid + boundary-block path
    # (batch=100 is not a multiple of the tile).
    x2 = jax.random.normal(kx2, (100, d_in), jnp.float32)
    out2 = jax.block_until_ready(mlp_forward(x2, params, max_block_b=64))
    ref2 = mlp_reference(x2, params)
    assert out2.shape == (100, d_out)
    assert jnp.allclose(out2, ref2, atol=1e-4, rtol=1e-4)

    print("KERNEL_OK")
</pallas_src>

<mosaic_0001>
module attributes {stable_mosaic.version = 11 : i64} {
  func.func @mlp_kernel(%arg0: i32, %arg1: memref<2x128xf32, #tpu.memory_space<vmem>>, %arg2: memref<128x256xf32, #tpu.memory_space<vmem>>, %arg3: memref<1x256xf32, #tpu.memory_space<vmem>>, %arg4: memref<256x64xf32, #tpu.memory_space<vmem>>, %arg5: memref<1x64xf32, #tpu.memory_space<vmem>>, %arg6: memref<2x64xf32, #tpu.memory_space<vmem>>) attributes {dimension_semantics = [#tpu.dimension_semantics<parallel>], iteration_bounds = array<i64: 1>, scalar_prefetch = 0 : i64, scratch_operands = 0 : i64, tpu.core_type = #tpu.core_type<tc>, window_params = [{transform_indices = @transform_0, window_bounds = array<i64: 2, 128>}, {pipeline_mode = #tpu.pipeline_mode<synchronous>, transform_indices = @transform_1, window_bounds = array<i64: 128, 256>}, {pipeline_mode = #tpu.pipeline_mode<synchronous>, transform_indices = @transform_2, window_bounds = array<i64: 1, 256>}, {pipeline_mode = #tpu.pipeline_mode<synchronous>, transform_indices = @transform_3, window_bounds = array<i64: 256, 64>}, {pipeline_mode = #tpu.pipeline_mode<synchronous>, transform_indices = @transform_4, window_bounds = array<i64: 1, 64>}, {transform_indices = @transform_5, window_bounds = array<i64: 2, 64>}]} {
    %c0 = arith.constant 0 : index
    %c0_0 = arith.constant 0 : index
    %0 = vector.load %arg1[%c0, %c0_0] : memref<2x128xf32, #tpu.memory_space<vmem>>, vector<2x128xf32>
    %c0_1 = arith.constant 0 : index
    %c0_2 = arith.constant 0 : index
    %1 = vector.load %arg2[%c0_1, %c0_2] : memref<128x256xf32, #tpu.memory_space<vmem>>, vector<128x256xf32>
    %cst = arith.constant dense<0.000000e+00> : vector<2x256xf32>
    %2 = tpu.matmul %0, %1, %cst {dimension_numbers = #tpu.dot_dimension_numbers<[1], [0], [0], [1], [0, 0, 1, 1], [], []>} : vector<2x128xf32>, vector<128x256xf32>, vector<2x256xf32> -> vector<2x256xf32>
    %c0_3 = arith.constant 0 : index
    %c0_4 = arith.constant 0 : index
    %3 = vector.load %arg3[%c0_3, %c0_4] : memref<1x256xf32, #tpu.memory_space<vmem>>, vector<1x256xf32>
    %4 = vector.broadcast %3 : vector<1x256xf32> to vector<2x256xf32>
    %5 = arith.addf %2, %4 : vector<2x256xf32>
    %cst_5 = arith.constant 0.000000e+00 : f32
    %6 = vector.broadcast %cst_5 : f32 to vector<2x256xf32>
    %7 = arith.maximumf %5, %6 : vector<2x256xf32>
    %c0_6 = arith.constant 0 : index
    %c0_7 = arith.constant 0 : index
    %8 = vector.load %arg4[%c0_6, %c0_7] : memref<256x64xf32, #tpu.memory_space<vmem>>, vector<256x64xf32>
    %cst_8 = arith.constant dense<0.000000e+00> : vector<2x64xf32>
    %9 = tpu.matmul %7, %8, %cst_8 {dimension_numbers = #tpu.dot_dimension_numbers<[1], [0], [0], [1], [0, 0, 1, 1], [], []>} : vector<2x256xf32>, vector<256x64xf32>, vector<2x64xf32> -> vector<2x64xf32>
    %c0_9 = arith.constant 0 : index
    %c0_10 = arith.constant 0 : index
    %10 = vector.load %arg5[%c0_9, %c0_10] : memref<1x64xf32, #tpu.memory_space<vmem>>, vector<1x64xf32>
    %11 = vector.broadcast %10 : vector<1x64xf32> to vector<2x64xf32>
    %12 = arith.addf %9, %11 : vector<2x64xf32>
    %c0_11 = arith.constant 0 : index
    %c0_12 = arith.constant 0 : index
    %13 = vector.load %arg6[%c0_11, %c0_12] : memref<2x64xf32, #tpu.memory_space<vmem>>, vector<2x64xf32>
    tpu.vector_store %arg6[%c0_11, %c0_12], %12 {strides = array<i32>} : memref<2x64xf32, #tpu.memory_space<vmem>>, vector<2x64xf32>,
    return
  }
  func.func @transform_0(%arg0: i32) -> (i32, i32) {
    %c0_i32 = arith.constant 0 : i32
    %c0_i32_0 = arith.constant 0 : i32
    return %arg0, %c0_i32 : i32, i32
  }
  func.func @transform_1(%arg0: i32) -> (i32, i32) {
    %c0_i32 = arith.constant 0 : i32
    %c0_i32_0 = arith.constant 0 : i32
    %c0_i32_1 = arith.constant 0 : i32
    return %c0_i32, %c0_i32_0 : i32, i32
  }
  func.func @transform_2(%arg0: i32) -> (i32, i32) {
    %c0_i32 = arith.constant 0 : i32
    %c0_i32_0 = arith.constant 0 : i32
    %c0_i32_1 = arith.constant 0 : i32
    return %c0_i32, %c0_i32_0 : i32, i32
  }
  func.func @transform_3(%arg0: i32) -> (i32, i32) {
    %c0_i32 = arith.constant 0 : i32
    %c0_i32_0 = arith.constant 0 : i32
    %c0_i32_1 = arith.constant 0 : i32
    return %c0_i32, %c0_i32_0 : i32, i32
  }
  func.func @transform_4(%arg0: i32) -> (i32, i32) {
    %c0_i32 = arith.constant 0 : i32
    %c0_i32_0 = arith.constant 0 : i32
    %c0_i32_1 = arith.constant 0 : i32
    return %c0_i32, %c0_i32_0 : i32, i32
  }
  func.func @transform_5(%arg0: i32) -> (i32, i32) {
    %c0_i32 = arith.constant 0 : i32
    %c0_i32_0 = arith.constant 0 : i32
    return %arg0, %c0_i32 : i32, i32
  }
}

</mosaic_0001>

<bundles_post_ra>
// kernel: tpu_custom_call.1
= control target key start
LH: loop header
LB: loop body
LE: loop exit
PB: predicated region body
PF: predicated region fallthrough
CT: control target
= control target key end

     0   :  { %s459_s0 = inlined_call_operand.vmem [shape: f32[2,128], index: 0, kind: input, shape index: {}]   ;;  %s460_s1 = inlined_call_operand.vmem [shape: f32[128,256], index: 1, kind: input, shape index: {}]   ;;  %s461_s2 = inlined_call_operand.vmem [shape: f32[1,256], index: 2, kind: input, shape index: {}]   ;;  %s462_s3 = inlined_call_operand.vmem [shape: f32[256,64], index: 3, kind: input, shape index: {}]   ;;  %s463_s4 = inlined_call_operand.vmem [shape: f32[1,64], index: 4, kind: input, shape index: {}]   ;;  %s464_s5 = inlined_call_operand.hbm [shape: f32[2,64], index: 5, kind: output, shape index: {}]  }
   0x1   :  { %v52_v0 = vld [vmem:[%s460_s1 + $0xf0] sm:$0xff]  ;;  %v50_v1 = vld [vmem:[%s460_s1 + $0xe0] sm:$0xff]  ;;  %v53_v2 = vld [vmem:[%s460_s1 + $0xf8] sm:$0xff] }
   0x2   :  { %60 = vmatpush.msra.mxu0 %v52_v0  ;;  %80 = vmatpush.msra.mxu1 %v53_v2  ;;  %v51_v3 = vld [vmem:[%s460_s1 + $0xe8] sm:$0xff]  ;;  %v48_v4 = vld [vmem:[%s460_s1 + $0xd0] sm:$0xff]  ;;  %v49_v5 = vld [vmem:[%s460_s1 + $0xd8] sm:$0xff] }
   0x3   :  { %v46_v6 = vld [vmem:[%s460_s1 + $0xc0] sm:$0xff]  ;;  %v47_v7 = vld [vmem:[%s460_s1 + $0xc8] sm:$0xff]  ;;  %v44_v8 = vld [vmem:[%s460_s1 + $0xb0] sm:$0xff] }
   0x4   :  { %61 = vmatpush.msra.mxu0 %v50_v1  ;;  %81 = vmatpush.msra.mxu1 %v51_v3  ;;  %v45_v9 = vld [vmem:[%s460_s1 + $0xb8] sm:$0xff]  ;;  %v42_v10 = vld [vmem:[%s460_s1 + $0xa0] sm:$0xff]  ;;  %v43_v11 = vld [vmem:[%s460_s1 + $0xa8] sm:$0xff] }
   0x5   :  { %v40_v12 = vld [vmem:[%s460_s1 + $0x90] sm:$0xff]  ;;  %v41_v13 = vld [vmem:[%s460_s1 + $0x98] sm:$0xff]  ;;  %v38_v17 = vld [vmem:[%s460_s1 + $0x80] sm:$0xff] }
   0x6   :  { %62 = vmatpush.msra.mxu0 %v48_v4  ;;  %82 = vmatpush.msra.mxu1 %v49_v5  ;;  %v117_v14 = vld [vmem:[%s462_s3 + $0x78] sm:$0xff]  ;;  %v116_v15 = vld [vmem:[%s462_s3 + $0x70] sm:$0xff]  ;;  %v39_v18 = vld [vmem:[%s460_s1 + $0x88] sm:$0xff] }
   0x7   :  { %v133_v16 = vld [vmem:[%s462_s3 + $0xf8] sm:$0xff]  ;;  %138 = vmatpush.msra.mxu2 %v117_v14  ;;  %v132_v19 = vld [vmem:[%s462_s3 + $0xf0] sm:$0xff]  ;;  %v115_v20 = vld [vmem:[%s462_s3 + $0x68] sm:$0xff] }
   0x8   :  { %63 = vmatpush.msra.mxu0 %v46_v6  ;;  %83 = vmatpush.msra.mxu1 %v47_v7  ;;  %v131_v21 = vld [vmem:[%s462_s3 + $0xe8] sm:$0xff]  ;;  %v36_v22 = vld [vmem:[%s460_s1 + $0x70] sm:$0xff]  ;;  %v37_v23 = vld [vmem:[%s460_s1 + $0x78] sm:$0xff] }
   0x9   :  { %158 = vmatpush.msra.mxu3 %v133_v16  ;;  %139 = vmatpush.msra.mxu2 %v116_v15  ;;  %v114_v24 = vld [vmem:[%s462_s3 + $0x60] sm:$0xff]  ;;  %v35_v27 = vld [vmem:[%s460_s1 + $0x68] sm:$0xff]  ;;  %v113_v28 = vld [vmem:[%s462_s3 + $0x58] sm:$0xff] }
   0xa   :  { %64 = vmatpush.msra.mxu0 %v44_v8  ;;  %84 = vmatpush.msra.mxu1 %v45_v9  ;;  %v130_v25 = vld [vmem:[%s462_s3 + $0xe0] sm:$0xff]  ;;  %v129_v29 = vld [vmem:[%s462_s3 + $0xd8] sm:$0xff]  ;;  %v32_v30 = vld [vmem:[%s460_s1 + $0x50] sm:$0xff] }
   0xb   :  { %159 = vmatpush.msra.mxu3 %v132_v19  ;;  %v34_v26 = vld [vmem:[%s460_s1 + $0x60] sm:$0xff]  ;;  %140 = vmatpush.msra.mxu2 %v115_v20  ;;  %v33_v31 = vld [vmem:[%s460_s1 + $0x58] sm:$0xff]  ;;  %v112_v32 = vld [vmem:[%s462_s3 + $0x50] sm:$0xff] }
   0xc   :  { %65 = vmatpush.msra.mxu0 %v42_v10  ;;  %85 = vmatpush.msra.mxu1 %v43_v11  ;;  %v128_v33 = vld [vmem:[%s462_s3 + $0xd0] sm:$0xff]  ;;  %v30_v34 = vld [vmem:[%s460_s1 + $0x40] sm:$0xff]  ;;  %v31_v35 = vld [vmem:[%s460_s1 + $0x48] sm:$0xff] }
   0xd   :  { %160 = vmatpush.msra.mxu3 %v131_v21  ;;  %141 = vmatpush.msra.mxu2 %v114_v24 }
   0xe   :  { %66 = vmatpush.msra.mxu0 %v40_v12  ;;  %86 = vmatpush.msra.mxu1 %v41_v13 }
   0xf   :  { %161 = vmatpush.msra.mxu3 %v130_v25  ;;  %142 = vmatpush.msra.mxu2 %v113_v28 }
  0x10   :  { %67 = vmatpush.msra.mxu0 %v38_v17  ;;  %87 = vmatpush.msra.mxu1 %v39_v18 }
  0x11   :  { %162 = vmatpush.msra.mxu3 %v129_v29 }
  0x12   :  { %68 = vmatpush.msra.mxu0 %v36_v22  ;;  %88 = vmatpush.msra.mxu1 %v37_v23 }
  0x14   :  { %69 = vmatpush.msra.mxu0 %v34_v26  ;;  %89 = vmatpush.msra.mxu1 %v35_v27 }
  0x15   :  { %10 = vsyncpa [#allocation3], 0  ;;  %v111_v36 = vld [vmem:[%s462_s3 + $0x48] sm:$0xff]  ;;  %v28_v38 = vld [vmem:[%s460_s1 + $0x30] sm:$0xff]  ;;  %143 = vmatpush.msra.mxu2 %v112_v32  ;;  %163 = vmatpush.msra.mxu3 %v128_v33  ;;  %s187_s27 = sshll.u32 %s464_s5, 4  ;;  %vm178_vm0 = vcmask 517120   ;;  %s188_s27 = int_to_ptr.hbm [resolvable:$true] %s187_s27 }
  0x16   :  { %70 = vmatpush.msra.mxu0 %v32_v30  ;;  %90 = vmatpush.msra.mxu1 %v33_v31  ;;  %v127_v37 = vld [vmem:[%s462_s3 + $0xc8] sm:$0xff]  ;;  %v29_v39 = vld [vmem:[%s460_s1 + $0x38] sm:$0xff]  ;;  %v110_v40 = vld [vmem:[%s462_s3 + $0x40] sm:$0xff] }
  0x17   :  { %v126_v41 = vld [vmem:[%s462_s3 + $0xc0] sm:$0xff]  ;;  %v27_v43 = vld [vmem:[%s460_s1 + $0x28] sm:$0xff]  ;;  %144 = vmatpush.msra.mxu2 %v111_v36  ;;  %164 = vmatpush.msra.mxu3 %v127_v37  ;;  %v109_v44 = vld [vmem:[%s462_s3 + $0x38] sm:$0xff] }
  0x18   :  { %71 = vmatpush.msra.mxu0 %v30_v34  ;;  %91 = vmatpush.msra.mxu1 %v31_v35  ;;  %v26_v42 = vld [vmem:[%s460_s1 + $0x20] sm:$0xff]  ;;  %v125_v45 = vld [vmem:[%s462_s3 + $0xb8] sm:$0xff]  ;;  %v24_v46 = vld [vmem:[%s460_s1 + $0x10] sm:$0xff] }
  0x19   :  { %v25_v47 = vld [vmem:[%s460_s1 + $0x18] sm:$0xff]  ;;  %145 = vmatpush.msra.mxu2 %v110_v40  ;;  %165 = vmatpush.msra.mxu3 %v126_v41  ;;  %v108_v48 = vld [vmem:[%s462_s3 + $0x30] sm:$0xff]  ;;  %v22_v50 = vld [vmem:[%s460_s1] sm:$0xff] }
  0x1a   :  { %72 = vmatpush.msra.mxu0 %v28_v38  ;;  %92 = vmatpush.msra.mxu1 %v29_v39  ;;  %v124_v49 = vld [vmem:[%s462_s3 + $0xb0] sm:$0xff]  ;;  %v23_v51 = vld [vmem:[%s460_s1 + $0x8] sm:$0xff]  ;;  %v21_v52 = vld [vmem:[%s459_s0] sm:$0x3] }
  0x1b   :  { %146 = vmatpush.msra.mxu2 %v109_v44  ;;  %166 = vmatpush.msra.mxu3 %v125_v45  ;;  %v107_v53 = vld [vmem:[%s462_s3 + $0x28] sm:$0xff]  ;;  %v106_v55 = vld [vmem:[%s462_s3 + $0x20] sm:$0xff]  ;;  %v105_v57 = vld [vmem:[%s462_s3 + $0x18] sm:$0xff] }
  0x1c   :  { %73 = vmatpush.msra.mxu0 %v26_v42  ;;  %93 = vmatpush.msra.mxu1 %v27_v43  ;;  %v123_v54 = vld [vmem:[%s462_s3 + $0xa8] sm:$0xff]  ;;  %v122_v56 = vld [vmem:[%s462_s3 + $0xa0] sm:$0xff]  ;;  %v104_v58 = vld [vmem:[%s462_s3 + $0x10] sm:$0xff] }
  0x1d   :  { %147 = vmatpush.msra.mxu2 %v108_v48  ;;  %167 = vmatpush.msra.mxu3 %v124_v49  ;;  %v121_v59 = vld [vmem:[%s462_s3 + $0x98] sm:$0xff]  ;;  %v103_v60 = vld [vmem:[%s462_s3 + $0x8] sm:$0xff]  ;;  %v120_v61 = vld [vmem:[%s462_s3 + $0x90] sm:$0xff] }
  0x1e   :  { %74 = vmatpush.msra.mxu0 %v24_v46  ;;  %94 = vmatpush.msra.mxu1 %v25_v47  ;;  %v102_v62 = vld [vmem:[%s462_s3] sm:$0xff]  ;;  %v119_v63 = vld [vmem:[%s462_s3 + $0x88] sm:$0xff] }
  0x1f   :  { %148 = vmatpush.msra.mxu2 %v107_v53  ;;  %168 = vmatpush.msra.mxu3 %v123_v54  ;;  %v118_v0 = vld [vmem:[%s462_s3 + $0x80] sm:$0xff]  ;;  %s224_s3 = smov [#allocation2]  }
  0x20   :  { %75 = vmatpush.msra.mxu0 %v22_v50  ;;  %95 = vmatpush.msra.mxu1 %v23_v51  ;;  %v54_v1 = vld [vmem:[%s461_s2] sm:$0x3]  ;;  %s185_s25 = sshll.u32 %s224_s3, 4  ;;  %s186_s25 = int_to_ptr.vmem [resolvable:$true] %s185_s25 }
  0x21   :  { %76 = vmatmul.f32.vlgmr.msra.gmra.mxu0 %v21_v52  ;;  %96 = vmatmul.f32.vlgmr.msra.gmra.mxu1 %v21_v52  ;;  %v56_v2 = vperm.slane %v54_v1, 0  ;;  %v57_v3 = vperm.slane %v54_v1, 1  ;;  %v197_v10 = vld [vmem:[%s463_s4] ss:$0 sm:$0xff] }
  0x22   :  { %149 = vmatpush.msra.mxu2 %v106_v55  ;;  %169 = vmatpush.msra.mxu3 %v122_v56 }
  0x24   :  { %150 = vmatpush.msra.mxu2 %v105_v57  ;;  %170 = vmatpush.msra.mxu3 %v121_v59 }
  0x26   :  { %151 = vmatpush.msra.mxu2 %v104_v58  ;;  %171 = vmatpush.msra.mxu3 %v120_v61 }
  0x28   :  { %152 = vmatpush.msra.mxu2 %v103_v60  ;;  %172 = vmatpush.msra.mxu3 %v119_v63 }
  0x2a   :  { %153 = vmatpush.msra.mxu2 %v102_v62  ;;  %173 = vmatpush.msra.mxu3 %v118_v0 }
  0x9e   :  { %v77_v4 = vpop.f32.mrf.mxu0  ;;  %v97_v5 = vpop.f32.mrf.mxu1 }
  0x9f   :  { %v78_v6 = vadd.f32 %v77_v4, %v56_v2  ;;  %v98_v7 = vadd.f32 %v97_v5, %v57_v3 }
  0xa1   :  { %v100_v8 = vmax.f32 %v78_v6, 0.0  ;;  %v101_v9 = vmax.f32 %v98_v7, 0.0 }
  0xa3   :  { %154 = vmatmul.f32.vlgmr.msra.gmra.mxu2 %v100_v8  ;;  %174 = vmatmul.f32.vlgmr.msra.gmra.mxu3 %v101_v9 }
 0x126   :  { %v155_v11 = vpop.f32.mrf.mxu2  ;;  %v175_v12 = vpop.f32.mrf.mxu3 }
 0x127   :  { %v156_v13 = vadd.f32 %v197_v10, %v155_v11 }
 0x129   :  { %v176_v14 = vadd.f32 %v175_v12, %v156_v13 }
 0x12b   :  { %179 = vst.msk [vmem:[#allocation2] sm:$0x3] %vm178_vm0, %v176_v14 }
 0x12c   :  { %190 = dma.vmem_to_hbm [thread:$0]  %s186_s25, 32, %s188_s27, [#allocation3]  }
 0x12d   :  { %222 = dma.done.wait [#allocation3], 32  }
 0x12e   :  { %223 = vsyncadd [#allocation3], 4294967264 }
 0x12f   :  { %195 = vsyncpa [#allocation3], 1 }

</bundles_post_ra>
